<compile_context>
chip_gen: v7x
topology: tpu7x:2x2x1
jax: 0.10.0
libtpu: 0.0.40
codegen_flags: <defaults>
</compile_context>

<pallas_src>
import functools

import jax
import jax.numpy as jnp
from jax.experimental import pallas as pl
from jax.experimental.pallas import tpu as pltpu


def _round_down(v, m):
    return (v // m) * m


# Per-VMEM-buffer budget for one (NB, C, TT) f32 activation tile.  Input and
# output tiles are each double-buffered by the pipeline (~4 live buffers), so
# this keeps the working set around ~12 MiB + the tiny resident weight.
_PER_BUFFER_BYTES = 3 * 1024 * 1024


def _make_conv1x1_kernel(nb):
    def kernel(w_ref, x_ref, z_ref):
        # w_ref: (C, C) resident weight. x_ref/z_ref: (nb, C, TT) tile.
        # One MXU matmul per batch row in the tile; f32 accumulation.  The op
        # is bandwidth-bound at MoGlow channel counts, so MXU shape tuning is
        # irrelevant — keep a plain dot.
        w = w_ref[...]
        for n in range(nb):  # nb is a small static constant -> unrolled
            z_ref[n] = jnp.dot(
                w, x_ref[n], preferred_element_type=jnp.float32
            ).astype(z_ref.dtype)

    return kernel


def _conv1x1_pallas(weight, x, per_buffer_bytes=_PER_BUFFER_BYTES):
    """Apply z[n] = weight @ x[n] for all n — no wrapper-side pad or slice."""
    N, C, T = x.shape

    # Max time-tile length that fits one budgeted buffer.
    max_tt = max(128, per_buffer_bytes // (4 * C))

    if T <= max_tt:
        # Whole time axis in one block (full-dim exception: a trailing block
        # dim equal to the full array dim is legal even if not lane-aligned).
        tt = T
        # Amortize the fixed per-grid-step cost further by blocking batch.
        nb = max(1, min(N, per_buffer_bytes // max(1, 4 * C * T)))
    else:
        # Lane-dense (multiple-of-128) time tile, as large as budget allows;
        # the partial edge tile along T is masked by Pallas on store.
        tt = max(128, _round_down(max_tt, 128))
        nb = 1

    grid = (pl.cdiv(N, nb), pl.cdiv(T, tt))

    return pl.pallas_call(
        _make_conv1x1_kernel(nb),
        out_shape=jax.ShapeDtypeStruct((N, C, T), x.dtype),
        grid_spec=pltpu.PrefetchScalarGridSpec(
            num_scalar_prefetch=0,
            grid=grid,
            in_specs=[
                # (C, C) weight resident across every grid step.
                pl.BlockSpec((C, C), lambda n, t: (0, 0)),
                # (nb, C, tt) activation tile of x; edge tiles (batch or time)
                # are partial and handled by Pallas masking — no padding.
                pl.BlockSpec((nb, C, tt), lambda n, t: (n, 0, t)),
            ],
            out_specs=pl.BlockSpec((nb, C, tt), lambda n, t: (n, 0, t)),
        ),
        compiler_params=pltpu.CompilerParams(
            # Independent axes -> megacore sharding on v7x even when N is 1 or
            # odd; near-zero effect on single-TC v5e/v6e.
            dimension_semantics=("parallel", "parallel"),
        ),
        cost_estimate=pl.CostEstimate(
            flops=2 * N * C * C * T,
            transcendentals=0,
            bytes_accessed=(2 * N * C * T + C * C) * 4,
        ),
    )(weight, x)


@functools.partial(jax.jit, static_argnames=("reverse",))
def _invconv_forward(weight, x, logdet, reverse):
    """Fused forward: slogdet + (optional) inverse + Pallas conv + logdet."""
    timesteps = x.shape[-1]
    dlogdet = jnp.linalg.slogdet(weight)[1] * timesteps
    if not reverse:
        w = weight
    else:
        # TODO(synk): PyTorch inverts in float64 then casts; TPU has no f64,
        # so the inverse is obtained in f32 via an LU solve against identity.
        eye = jnp.eye(weight.shape[0], dtype=weight.dtype)
        w = jnp.linalg.solve(weight, eye)
    z = _conv1x1_pallas(w, x)
    if logdet is not None:
        logdet = logdet + dlogdet if not reverse else logdet - dlogdet
    return z, logdet


class InvertibleConv1x1:
    """JAX/Pallas port of trajevae.models.moglow.modules.InvertibleConv1x1
    (LU_decomposed=False path)."""

    def __init__(self, num_channels, key):
        # Deterministic init mirroring: np.linalg.qr(np.random.randn(C, C))[0]
        w_init = jax.random.normal(key, (num_channels, num_channels),
                                   dtype=jnp.float32)
        q, _ = jnp.linalg.qr(w_init)
        self.weight = q.astype(jnp.float32)           # (C, C)
        self.w_shape = (num_channels, num_channels)

    def __call__(self, x, logdet=None, reverse=False):
        """x: (N, C, T) float32. Returns (z, logdet) like the PyTorch module."""
        return _invconv_forward(self.weight, x, logdet, reverse=reverse)


if __name__ == "__main__":
    key = jax.random.PRNGKey(0)
    k_w, k_x, k_ld, k_w2, k_x2, k_w3, k_x3 = jax.random.split(key, 7)

    # --- small demo shapes (batch, channels, time) ---
    N, C, T = 2, 4, 16
    x = jax.random.normal(k_x, (N, C, T), dtype=jnp.float32)
    logdet = jax.random.normal(k_ld, (N,), dtype=jnp.float32)

    layer = InvertibleConv1x1(C, k_w)

    # Forward
    z, logdet_out = layer(x, logdet=logdet, reverse=False)
    z = jax.block_until_ready(z)
    logdet_out = jax.block_until_ready(logdet_out)

    # Reference check against plain-JAX conv1d-as-einsum
    z_ref = jnp.einsum("oc,nct->not", layer.weight, x)
    dlogdet_ref = jnp.linalg.slogdet(layer.weight)[1] * T
    assert jnp.allclose(z, z_ref, atol=1e-5, rtol=1e-5)
    assert jnp.allclose(logdet_out, logdet + dlogdet_ref, atol=1e-5, rtol=1e-5)

    # Reverse pass (should approximately invert the forward)
    x_rec, logdet_rec = layer(z, logdet=logdet_out, reverse=True)
    x_rec = jax.block_until_ready(x_rec)
    assert jnp.allclose(x_rec, x, atol=1e-4, rtol=1e-4)
    assert jnp.allclose(logdet_rec, logdet, atol=1e-4, rtol=1e-4)

    # --- second check: non-aligned C / ragged T, exercising the no-padding
    #     full-dim-C + full-T + batch-blocked path ---
    N2, C2, T2 = 3, 12, 200                     # C % 8 != 0, T % 128 != 0
    x2 = jax.random.normal(k_x2, (N2, C2, T2), dtype=jnp.float32)
    layer2 = InvertibleConv1x1(C2, k_w2)
    z2, _ = layer2(x2, logdet=None, reverse=False)
    z2 = jax.block_until_ready(z2)
    z2_ref = jnp.einsum("oc,nct->not", layer2.weight, x2)
    assert jnp.allclose(z2, z2_ref, atol=1e-5, rtol=1e-5)
    x2_rec, _ = layer2(z2, logdet=None, reverse=True)
    x2_rec = jax.block_until_ready(x2_rec)
    assert jnp.allclose(x2_rec, x2, atol=1e-4, rtol=1e-4)

    # --- third check: force the tiled-T path (tt < T) with a masked partial
    #     edge tile, using a deliberately tiny VMEM budget ---
    N3, C3, T3 = 1, 8, 300
    w3 = jax.random.normal(k_w3, (C3, C3), dtype=jnp.float32)
    x3 = jax.random.normal(k_x3, (N3, C3, T3), dtype=jnp.float32)
    z3 = _conv1x1_pallas(w3, x3, per_buffer_bytes=4 * C3 * 128)  # tt = 128
    z3 = jax.block_until_ready(z3)
    z3_ref = jnp.einsum("oc,nct->not", w3, x3)
    assert jnp.allclose(z3, z3_ref, atol=1e-5, rtol=1e-5)

    print("KERNEL_OK")
</pallas_src>

<mosaic_0001>
module attributes {stable_mosaic.version = 11 : i64} {
  func.func @kernel(%arg0: i32, %arg1: i32, %arg2: memref<4x4xf32, #tpu.memory_space<vmem>>, %arg3: memref<2x4x16xf32, #tpu.memory_space<vmem>>, %arg4: memref<2x4x16xf32, #tpu.memory_space<vmem>>) attributes {dimension_semantics = [#tpu.dimension_semantics<parallel>, #tpu.dimension_semantics<parallel>], iteration_bounds = array<i64: 1, 1>, scalar_prefetch = 0 : i64, scratch_operands = 0 : i64, tpu.core_type = #tpu.core_type<tc>, window_params = [{pipeline_mode = #tpu.pipeline_mode<synchronous>, transform_indices = @transform_0, window_bounds = array<i64: 4, 4>}, {transform_indices = @transform_1, window_bounds = array<i64: 2, 4, 16>}, {transform_indices = @transform_2, window_bounds = array<i64: 2, 4, 16>}]} {
    %c0 = arith.constant 0 : index
    %c0_0 = arith.constant 0 : index
    %0 = vector.load %arg2[%c0, %c0_0] : memref<4x4xf32, #tpu.memory_space<vmem>>, vector<4x4xf32>
    %c0_1 = arith.constant 0 : index
    %c0_2 = arith.constant 0 : index
    %c0_3 = arith.constant 0 : index
    %1 = vector.load %arg3[%c0_1, %c0_2, %c0_3] : memref<2x4x16xf32, #tpu.memory_space<vmem>>, vector<1x4x16xf32>
    %2 = vector.shape_cast %1 : vector<1x4x16xf32> to vector<4x16xf32>
    %cst = arith.constant dense<0.000000e+00> : vector<4x16xf32>
    %3 = tpu.matmul %0, %2, %cst {dimension_numbers = #tpu.dot_dimension_numbers<[1], [0], [0], [1], [0, 0, 1, 1], [], []>} : vector<4x4xf32>, vector<4x16xf32>, vector<4x16xf32> -> vector<4x16xf32>
    %c0_4 = arith.constant 0 : index
    %c0_5 = arith.constant 0 : index
    %c0_6 = arith.constant 0 : index
    %4 = vector.load %arg4[%c0_4, %c0_5, %c0_6] : memref<2x4x16xf32, #tpu.memory_space<vmem>>, vector<1x4x16xf32>
    %5 = vector.shape_cast %4 : vector<1x4x16xf32> to vector<4x16xf32>
    %6 = vector.shape_cast %3 : vector<4x16xf32> to vector<1x4x16xf32>
    tpu.vector_store %arg4[%c0_4, %c0_5, %c0_6], %6 {strides = array<i32>} : memref<2x4x16xf32, #tpu.memory_space<vmem>>, vector<1x4x16xf32>,
    %c1 = arith.constant 1 : index
    %c0_7 = arith.constant 0 : index
    %c0_8 = arith.constant 0 : index
    %7 = vector.load %arg3[%c1, %c0_7, %c0_8] : memref<2x4x16xf32, #tpu.memory_space<vmem>>, vector<1x4x16xf32>
    %8 = vector.shape_cast %7 : vector<1x4x16xf32> to vector<4x16xf32>
    %cst_9 = arith.constant dense<0.000000e+00> : vector<4x16xf32>
    %9 = tpu.matmul %0, %8, %cst_9 {dimension_numbers = #tpu.dot_dimension_numbers<[1], [0], [0], [1], [0, 0, 1, 1], [], []>} : vector<4x4xf32>, vector<4x16xf32>, vector<4x16xf32> -> vector<4x16xf32>
    %c1_10 = arith.constant 1 : index
    %c0_11 = arith.constant 0 : index
    %c0_12 = arith.constant 0 : index
    %10 = vector.load %arg4[%c1_10, %c0_11, %c0_12] : memref<2x4x16xf32, #tpu.memory_space<vmem>>, vector<1x4x16xf32>
    %11 = vector.shape_cast %10 : vector<1x4x16xf32> to vector<4x16xf32>
    %12 = vector.shape_cast %9 : vector<4x16xf32> to vector<1x4x16xf32>
    tpu.vector_store %arg4[%c1_10, %c0_11, %c0_12], %12 {strides = array<i32>} : memref<2x4x16xf32, #tpu.memory_space<vmem>>, vector<1x4x16xf32>,
    return
  }
  func.func @transform_0(%arg0: i32, %arg1: i32) -> (i32, i32) {
    %c0_i32 = arith.constant 0 : i32
    %c0_i32_0 = arith.constant 0 : i32
    %c0_i32_1 = arith.constant 0 : i32
    return %c0_i32, %c0_i32_0 : i32, i32
  }
  func.func @transform_1(%arg0: i32, %arg1: i32) -> (i32, i32, i32) {
    %c0_i32 = arith.constant 0 : i32
    %c0_i32_0 = arith.constant 0 : i32
    return %arg0, %c0_i32, %arg1 : i32, i32, i32
  }
  func.func @transform_2(%arg0: i32, %arg1: i32) -> (i32, i32, i32) {
    %c0_i32 = arith.constant 0 : i32
    %c0_i32_0 = arith.constant 0 : i32
    return %arg0, %c0_i32, %arg1 : i32, i32, i32
  }
}

</mosaic_0001>

<bundles_post_ra>
// kernel: custom-call.2
= control target key start
LH: loop header
LB: loop body
LE: loop exit
PB: predicated region body
PF: predicated region fallthrough
CT: control target
= control target key end

     0   :  { %5 = vsyncpa [#allocation6], 0  ;;  %s562_s0 = inlined_call_operand.vmem [shape: f32[4,4], index: 0, kind: input, shape index: {}]   ;;  %s563_s1 = inlined_call_operand.vmem [shape: f32[4,4], index: 1, kind: output, shape index: {0}]   ;;  %s564_s2 = inlined_call_operand.hbm [shape: s32[4], index: 2, kind: output, shape index: {1}]   ;;  %s565_s3 = inlined_call_operand.hbm [shape: s32[4], index: 3, kind: output, shape index: {2}]  }
   0x1   :  { %6 = vsyncpa [#allocation9], 0  ;;  %v67_v0 = vld [vmem:[%s562_s0] sm:$0xf]  ;;  %v76_v1 = vlaneseq  ;;  %v473_v2 = vmov 0   ;;  %s503_s14 = smov 0  }
   0x2   :  { %68 = vst [vmem:[#allocation1] sm:$0xf] %v67_v0  ;;  %75 = vst [vmem:[#allocation4] sm:$0x1] %v473_v2 }
   0x3   :  { %v500_v3 = vshrl.u32 %v76_v1, 7 }
   0x5   :  { %80 = vst [vmem:[#allocation10] sm:$0xff] %v500_v3 }
   0x9   :  { %v71_v4 = vld [vmem:[#allocation1] sm:$0xf] }
   0xa   :  { %72 = vst [vmem:[#allocation0] sm:$0xf] %v71_v4 }
  0x11   :  { %v73_v5 = vld [vmem:[#allocation0] sm:$0xff] }
  0x12   :  { %74 = vst [vmem:[#allocation2] sm:$0xff] %v73_v5 }
  0x13 LB: > { %vm96_vm0 = vcmp.lt.s32.totalorder %v500_v3, 4  ;;  %v510_v8 = vstv %s471_s14  ;;  %s137_s0 = ssub.s32 128, %s471_s14  ;;  %v143_v38 = vand.u32 127, %v76_v1  ;;  %v146_v40 = vld [vmem:[#allocation4] ss:$0 sm:$0xff]  ;;  %s149_s15 = scalar_lea.vmem [#allocation2], %s471_s14  ;;  %s471_s14 = sphi %s503_s14, %s86_s14  }
  0x14   : > { %vm95_vm1 = vcmp.ge.s32.totalorder %v500_v3, %v510_v8  ;;  %s155_s17 = scalar_lea.vmem [#allocation10], %s471_s14  ;;  %vm175_vm15 = vcmp.gt.s32.totalorder %v500_v3, %v510_v8  ;;  %s86_s14 = sadd.s32 1, %s471_s14  }
  0x15   : > { %vm97_vm3 = vmand %vm95_vm1, %vm96_vm0  ;;  %vm167_vm12 = vcmp.gt.s32.totalorder %v143_v38, %v510_v8  ;;  %vm144_vm13 = vcmp.eq.s32.totalorder %v143_v38, %v510_v8  ;;  %v157_v42 = vld [vmem:[%s155_s17] ss:$0 sm:$0xff]  ;;  %p83_p0 = scmp.ge.s32.totalorder %s86_s14, 4  }
  0x16   : > { %vm179_vm1 = vmand %vm175_vm15, %vm144_vm13  ;;  %s474_s20 = smov (%p83_p0), [#allocation5]  }
  0x17   :  { %s320_s21 = sshll.u32 (%p83_p0), %s474_s20, 4  ;;  %s321_s21 = int_to_ptr.vmem [resolvable:$true] %s320_s21 }
  0x18   :  { %s417_s22 = scalar_lea.vmem (%p83_p0), %s321_s21, 16  ;;  %s421_s23 = scalar_lea.vmem (%p83_p0), %s321_s21, 32 }
  0x19   : > { %v91_v6 = vld [vmem:[#allocation2] sm:$0xff]  ;;  %v151_v41 = vld [vmem:[%s149_s15] ss:$0 sm:$0xff]  ;;  %p418_p1 = scmp.ne.s32.totalorder (%p83_p0), %s321_s21, %s417_s22  ;;  %p422_p2 = scmp.lt.s32.totalorder (%p83_p0), %s321_s21, %s321_s21 }
  0x1a   : > { %v92_v7 = vand.u32 2147483647, %v91_v6  ;;  %p423_p3 = scmp.lt.s32.totalorder (%p83_p0), %s421_s23, %s417_s22 }
  0x1c   : > { %vm398_vm2 = vcmp.gt.f32.partialorder %v92_v7, -inf  ;;  %p424_p4 = por (%p83_p0), %p423_p3, %p422_p2 }
  0x1d   : > { %vm99_vm4 = vmand %vm97_vm3, %vm398_vm2 }
  0x1e   : > { %v100_v9 = vsel %vm99_vm4, %v500_v3, %v510_v8  ;;  %v101_v10 = vsel %vm99_vm4, %v92_v7, -inf  ;;  %p425_p5 = pnand (%p83_p0), %p424_p4, %p418_p1 }
  0x1f   : > { %v102_v11 = vrot.slane %v101_v10, 1  ;;  %v103_v12 = vrot.slane %v100_v9, 1 }
  0x21   : > { %vm104_vm5 = vcmp.ge.f32.partialorder %v102_v11, %v101_v10  ;;  %v107_v13 = vrot.slane %v102_v11, 1  ;;  %v108_v14 = vrot.slane %v103_v12, 1 }
  0x22   : > { %v105_v15 = vsel %vm104_vm5, %v102_v11, %v101_v10  ;;  %v106_v16 = vsel %vm104_vm5, %v103_v12, %v100_v9 }
  0x23   : > { %vm109_vm6 = vcmp.ge.f32.partialorder %v107_v13, %v105_v15  ;;  %v112_v17 = vrot.slane %v107_v13, 1  ;;  %v113_v18 = vrot.slane %v108_v14, 1 }
  0x24   : > { %v110_v19 = vsel %vm109_vm6, %v107_v13, %v105_v15  ;;  %v111_v20 = vsel %vm109_vm6, %v108_v14, %v106_v16 }
  0x25   : > { %vm114_vm7 = vcmp.ge.f32.partialorder %v112_v17, %v110_v19  ;;  %v117_v21 = vrot.slane %v112_v17, 1  ;;  %v118_v22 = vrot.slane %v113_v18, 1 }
  0x26   : > { %v115_v23 = vsel %vm114_vm7, %v112_v17, %v110_v19  ;;  %v116_v24 = vsel %vm114_vm7, %v113_v18, %v111_v20 }
  0x27   : > { %vm119_vm8 = vcmp.ge.f32.partialorder %v117_v21, %v115_v23  ;;  %v122_v25 = vrot.slane %v117_v21, 1  ;;  %v123_v26 = vrot.slane %v118_v22, 1 }
  0x28   : > { %v120_v27 = vsel %vm119_vm8, %v117_v21, %v115_v23  ;;  %v121_v28 = vsel %vm119_vm8, %v118_v22, %v116_v24 }
  0x29   : > { %vm124_vm9 = vcmp.ge.f32.partialorder %v122_v25, %v120_v27  ;;  %v127_v29 = vrot.slane %v122_v25, 1  ;;  %v128_v30 = vrot.slane %v123_v26, 1 }
  0x2a   : > { %v125_v31 = vsel %vm124_vm9, %v122_v25, %v120_v27  ;;  %v126_v32 = vsel %vm124_vm9, %v123_v26, %v121_v28 }
  0x2b   : > { %vm129_vm10 = vcmp.ge.f32.partialorder %v127_v29, %v125_v31  ;;  %v132_v33 = vrot.slane %v127_v29, 1  ;;  %v133_v34 = vrot.slane %v128_v30, 1 }
  0x2c   : > { %v130_v35 = vsel %vm129_vm10, %v127_v29, %v125_v31  ;;  %v131_v36 = vsel %vm129_vm10, %v128_v30, %v126_v32 }
  0x2d   : > { %vm134_vm11 = vcmp.ge.f32.partialorder %v132_v33, %v130_v35 }
  0x2e   : > { %v136_v37 = vsel %vm134_vm11, %v133_v34, %v131_v36 }
  0x2f   : > { %138 = vrot.lane.b32.xlu0 %v136_v37, %s137_s0 }
  0xa1   : > { %v139_v39 = vpop.permute.xlu0 %138 }
  0xa2   : > { %402 = vpush %v139_v39 }
  0xd3   : > { %s403_s16 = spop %402 }
  0xd4   : > { %v145_v43 = vstv %s403_s16  ;;  %s150_s18 = scalar_lea.vmem [#allocation2], %s403_s16  ;;  %s156_s19 = scalar_lea.vmem [#allocation10], %s403_s16 }
  0xd5   : > { %v152_v44 = vld [vmem:[%s150_s18] ss:$0 sm:$0xff]  ;;  %v147_v46 = vsel %vm144_vm13, %v145_v43, %v146_v40 }
  0xd6   : > { %v158_v45 = vld [vmem:[%s156_s19] ss:$0 sm:$0xff]  ;;  %153 = vst [vmem:[%s150_s18] sm:$0x1] %v151_v41  ;;  %vm161_vm14 = vcmp.ne.f32.partialorder %v152_v44, 0.0  ;;  %148 = vst [vmem:[#allocation4] sm:$0x1] %v147_v46 }
  0xd7   : > { %159 = vst [vmem:[%s156_s19] sm:$0x1] %v157_v42  ;;  %154 = vst [vmem:[%s149_s15] sm:$0x1] %v152_v44  ;;  %v168_v53 = vsel %vm167_vm12, %v152_v44, 0.0 }
  0xd8   : > { %160 = vst [vmem:[%s155_s17] sm:$0x1] %v158_v45  ;;  %vm162_vm0 = vmand %vm144_vm13, %vm161_vm14 }
  0xd9   : > { %v163_v47 = vsel %vm162_vm0, %v152_v44, 1.0 }
  0xda   : > { %v176_v48 = vsel %vm175_vm15, %v163_v47, 1.0 }
  0xdb   : > { %415 = vrcp.f32 %v176_v48 }
  0xdd   :  { %v244_v59 = vld [vmem:[#allocation4] sm:$0x1] (%p83_p0) }
  0xde   : > { %v172_v50 = vld [vmem:[#allocation2] sm:$0xff]  ;;  %246 = vst [vmem:[#allocation5] sm:$0x1] (%p83_p0), %v244_v59 }
  0xdf   :  { %v186_v57 = vld [vmem:[#allocation10] sm:$0xff] (%p83_p0) }
  0xe5   : > { %v416_v49 = vpop.eup %415 }
  0xe6   : > { %v178_v51 = vmul.f32 %v416_v49, %v172_v50 }
  0xe8   : > { %v180_v52 = vsel %vm179_vm1, %v178_v51, 0.0 }
  0xe9   : > { %181 = vadd.xlane.f32.xlu0 %v180_v52 }
 0x116   :  { %202 = vxpose.xlu0.b32.start.end [1/1] (short) (narrow) (%p83_p0), %v186_v57, 8 }
 0x175   :  { %85 = sbr.rel (!%p83_p0) target bundleno = 19 (0x13), region = 134 }
 0x176   : > { %v182_v54 = vpop.xlane.xlu0 %181 }
 0x177   : > { %v183_v55 = vmul.f32 %v182_v54, %v168_v53 }
 0x179   : > { %v184_v56 = vsub.f32 %v178_v51, %v183_v55 }
 0x17b   : > { %185 = vst [vmem:[#allocation2] sm:$0xff] %v184_v56 }
 0x182   :  { %v238_v58 = vld [vmem:[#allocation2] sm:$0xf] }
 0x183   :  { %240 = vst [vmem:[#allocation3] sm:$0xf] %v238_v58 }
 0x184   :  { %428 = shalt.err (!%p425_p5)
}
 0x185   :  { %s429_s26 = scalar_lea.hbm %s564_s2, 16 }
 0x186   :  { %p430_p6 = scmp.ne.s32.totalorder %s564_s2, %s429_s26  ;;  %p433_p7 = scmp.lt.u32.totalorder %s429_s26, %s564_s2 }
 0x188   :  { %p435_p8 = pnand %p433_p7, %p430_p6 }
 0x18a   :  { %438 = shalt.err (!%p435_p8)
}
 0x18b   :  { %323 = dma.vmem_to_hbm [thread:$0]  %s321_s21, 16, %s564_s2, [#allocation6]   ;;  %v313_v60 = vld [vmem:[#allocation3] sm:$0xf] }
 0x18c   :  { %314 = vst [vmem:[%s563_s1] sm:$0xf] %v313_v60  ;;  %s475_s8 = smov [#allocation8]  }
 0x18d   :  { %s329_s9 = sshll.u32 %s475_s8, 4  ;;  %s330_s9 = int_to_ptr.vmem [resolvable:$true] %s329_s9 }
 0x18e   :  { %s439_s10 = scalar_lea.vmem %s330_s9, 16  ;;  %s443_s11 = scalar_lea.vmem %s330_s9, 32 }
 0x18f   :  { %p440_p9 = scmp.ne.s32.totalorder %s330_s9, %s439_s10  ;;  %p444_p10 = scmp.lt.s32.totalorder %s330_s9, %s330_s9 }
 0x190   :  { %p445_p11 = scmp.lt.s32.totalorder %s443_s11, %s439_s10 }
 0x192   :  { %p446_p12 = por %p445_p11, %p444_p10 }
 0x194   :  { %p447_p13 = pnand %p446_p12, %p440_p9 }
 0x196   :  { %v218_v61 = vpop.trf.xlu0 }
 0x197   :  { %234 = vst [vmem:[#allocation7] sm:$0x1] %v218_v61 }
 0x19e   :  { %v250_v62 = vld [vmem:[#allocation7] sm:$0x1] }
 0x19f   :  { %252 = vst [vmem:[#allocation8] sm:$0x1] %v250_v62 }
 0x1a0   :  { %450 = shalt.err (!%p447_p13)
}
 0x1a1   :  { %s451_s13 = scalar_lea.hbm %s565_s3, 16 }
 0x1a2   :  { %p452_p0 = scmp.ne.s32.totalorder %s565_s3, %s451_s13  ;;  %p455_p1 = scmp.lt.u32.totalorder %s451_s13, %s565_s3 }
 0x1a4   :  { %p457_p2 = pnand %p455_p1, %p452_p0 }
 0x1a6   :  { %460 = shalt.err (!%p457_p2)
}
 0x1a7   :  { %332 = dma.vmem_to_hbm [thread:$0]  %s330_s9, 16, %s565_s3, [#allocation9]  }
 0x1a8   :  { %465 = dma.done.wait [#allocation6], 16  }
 0x1a9   :  { %466 = vsyncadd [#allocation6], 4294967280 }
 0x1aa   :  { %467 = dma.done.wait [#allocation9], 16  }
 0x1ab   :  { %468 = vsyncadd [#allocation9], 4294967280 }
 0x1ac   :  { %339 = vsyncpa [#allocation6], 1 }
 0x1ad   :  { %340 = vsyncpa [#allocation9], 1 }

// kernel: _invconv_forward.1
= control target key start
LH: loop header
LB: loop body
LE: loop exit
PB: predicated region body
PF: predicated region fallthrough
CT: control target
= control target key end

     0   :  { %vm18_vm0 = vcmask 1043456   ;;  %vm14_vm1 = vcmask 31744   ;;  %v235_v1 = vmov 0.0   ;;  %s276_s0 = inlined_call_operand.vmem [shape: f32[4,4], index: 0, kind: input, shape index: {}]   ;;  %s277_s1 = inlined_call_operand.vmem [shape: f32[2,4,16], index: 1, kind: input, shape index: {}]   ;;  %s278_s2 = inlined_call_operand.hbm [shape: f32[2,4,16], index: 2, kind: output, shape index: {}]  }
   0x1   :  { %v13_v0 = vld [vmem:[%s277_s1] sm:$0xf]  ;;  %196 = vmatprep.subr.mxu0 %v235_v1  ;;  %201 = vmatprep.subr.mxu1 %v235_v1  ;;  %v189_v2 = vld [vmem:[%s277_s1 + $0x4] sm:$0xf] }
   0x2   :  { %v12_v3 = vld [vmem:[%s276_s0] sm:$0xf] }
   0x3   :  { %7 = vsyncpa [#allocation3], 0  ;;  %197 = vmatpush3.msk.msra.mxu0 %vm18_vm0, %v13_v0  ;;  %vm236_vm2 = vmmov 0   ;;  %202 = vmatpush3.msk.msra.mxu1 %vm18_vm0, %v189_v2  ;;  %s237_s15 = smov [#allocation2]   ;;  %vm92_vm3 = vcmask 125952  }
   0x4   :  { %198 = vmatprep.mubr.msk.f32.mxu0 %vm236_vm2, %v235_v1  ;;  %203 = vmatprep.mubr.msk.f32.mxu1 %vm236_vm2, %v235_v1  ;;  %s176_s16 = sshll.u32 %s237_s15, 4  ;;  %s177_s16 = int_to_ptr.vmem [resolvable:$true] %s176_s16 }
   0x5   :  { %199 = vmatmul.mubr.msk.f32.vlgmr.msra.gmra.mrb[0].mxu0 %vm14_vm1, %v12_v3  ;;  %204 = vmatmul.mubr.msk.f32.vlgmr.msra.gmra.mrb[0].mxu1 %vm14_vm1, %v12_v3  ;;  %s211_s1 = scalar_lea.vmem %s177_s16, 128  ;;  %p216_p1 = scmp.lt.s32.totalorder %s177_s16, %s177_s16 }
   0x6   :  { %p212_p0 = scmp.ne.s32.totalorder %s177_s16, %s211_s1  ;;  %p217_p2 = scmp.lt.s32.totalorder %s211_s1, %s211_s1 }
   0x8   :  { %p218_p3 = por %p217_p2, %p216_p1 }
   0xa   :  { %p219_p4 = pnand %p218_p3, %p212_p0 }
  0xd8   :  { %v88_v4 = vpop.f32.mrb[0].mxu0  ;;  %v165_v5 = vpop.f32.mrb[0].mxu1 }
  0xd9   :  { %93 = vst.msk [vmem:[#allocation2] sm:$0xf] %vm92_vm3, %v88_v4  ;;  %170 = vst.msk [vmem:[#allocation2 + $0x4] sm:$0xf] %vm92_vm3, %v165_v5  ;;  %v200_v6 = vpop.f32.mrb[1].mxu0  ;;  %v205_v7 = vpop.f32.mrb[1].mxu1 }
  0xda   :  { %222 = shalt.err (!%p219_p4)
}
  0xdb   :  { %s223_s18 = scalar_lea.hbm %s278_s2, 128 }
  0xdc   :  { %p224_p5 = scmp.ne.s32.totalorder %s278_s2, %s223_s18  ;;  %p227_p6 = scmp.lt.u32.totalorder %s223_s18, %s278_s2 }
  0xde   :  { %p229_p7 = pnand %p227_p6, %p224_p5 }
  0xe0   :  { %232 = shalt.err (!%p229_p7)
}
  0xe1   :  { %s238_s23 = smov 64   ;;  %s239_s24 = smov 4  }
  0xe2   :  { %182 = dma.vmem_to_hbm [thread:$0]  %s177_s16, 128, %s278_s2, [#allocation3], %s238_s23, %s238_s23, %s239_s24  }
  0xe3   :  { %233 = dma.done.wait [#allocation3], 128  }
  0xe4   :  { %234 = vsyncadd [#allocation3], 4294967168 }
  0xe5   :  { %186 = vsyncpa [#allocation3], 1 }

</bundles_post_ra>
